<compile_context>
chip_gen: v5e
topology: v5e:2x2
jax: 0.10.0
libtpu: 0.0.40
codegen_flags: <defaults>
</compile_context>

<pallas_src>
import jax
import jax.numpy as jnp
from jax.experimental import pallas as pl
from jax.experimental.pallas import tpu as pltpu


# ----------------------------------------------------------------------------
# Pallas kernel
# ----------------------------------------------------------------------------
def _diffusion_embedding_kernel(
    low_ref, high_ref, frac_ref,        # SMEM: [B] i32, [B] i32, [B] f32
    table_ref,                          # VMEM: [S, 128] f32 (full table, DMA'd once)
    w1_ref, b1_ref,                     # VMEM: [128, 512] bf16, [1, 512] f32
    w2_ref, b2_ref,                     # VMEM: [512, TN] bf16, [1, TN] f32 (column chunk k)
    o_ref,                              # VMEM out: [B, TN] f32 (column chunk k)
    x_scratch, h_scratch,               # VMEM scratch: [B, 128] f32, [B, 512] f32
):
    k = pl.program_id(0)

    @pl.when(k == 0)
    def _():
        # Fused embedding lookup / lerp (integer path: frac == 0, low == high).
        B = x_scratch.shape[0]
        for b in range(B):                                    # B is small & static
            lo = table_ref[pl.ds(low_ref[b], 1), :]           # [1, 128]
            hi = table_ref[pl.ds(high_ref[b], 1), :]          # [1, 128]
            x_scratch[pl.ds(b, 1), :] = lo + (hi - lo) * frac_ref[b]
        # First projection: h = silu(x @ W1 + b1).  bf16 operands on the MXU,
        # f32 accumulation, bias-add + SiLU strictly in f32.
        h = jnp.dot(x_scratch[...].astype(jnp.bfloat16), w1_ref[...],
                    preferred_element_type=jnp.float32)
        h = h + b1_ref[...]
        h_scratch[...] = h * jax.nn.sigmoid(h)

    # Second projection, one 128-wide output-column chunk per grid step.  The
    # W2 chunk DMA for step k+1 overlaps this compute (BlockSpec double-buffer).
    o = jnp.dot(h_scratch[...].astype(jnp.bfloat16), w2_ref[...],
                preferred_element_type=jnp.float32)
    o = o + b2_ref[...]
    o_ref[...] = o * jax.nn.sigmoid(o)                        # SiLU in f32


def _diffusion_embedding_pallas(low, high, frac, table, w1, b1, w2, b2):
    """low/high: [B] i32, frac: [B] f32, table: [S,128] f32,
    w1: [128,512] bf16, b1: [1,512] f32, w2: [512,512] bf16, b2: [1,512] f32."""
    B = low.shape[0]
    S, D_in = table.shape
    D_hid = w1.shape[1]
    D_out = w2.shape[1]
    TN = 128                                   # output-column chunk (lane-dense)
    assert D_out % TN == 0
    n_chunks = D_out // TN

    def _nbytes(a):
        return int(a.size) * a.dtype.itemsize

    flops = 2 * B * (D_in * D_hid + D_hid * D_out)
    transcendentals = B * (D_hid + D_out)                      # two SiLU layers
    bytes_accessed = (sum(_nbytes(a) for a in (low, high, frac, table, w1, b1, w2, b2))
                      + B * D_out * 4)

    grid_spec = pltpu.PrefetchScalarGridSpec(
        num_scalar_prefetch=0,
        grid=(n_chunks,),
        in_specs=[
            pl.BlockSpec(memory_space=pltpu.MemorySpace.SMEM),   # low
            pl.BlockSpec(memory_space=pltpu.MemorySpace.SMEM),   # high
            pl.BlockSpec(memory_space=pltpu.MemorySpace.SMEM),   # frac
            pl.BlockSpec((S, D_in), lambda k: (0, 0)),           # table (fetched once)
            pl.BlockSpec((D_in, D_hid), lambda k: (0, 0)),       # w1    (fetched once)
            pl.BlockSpec((1, D_hid), lambda k: (0, 0)),          # b1
            pl.BlockSpec((D_hid, TN), lambda k: (0, k)),         # w2 column chunk (streamed)
            pl.BlockSpec((1, TN), lambda k: (0, k)),             # b2 chunk
        ],
        out_specs=pl.BlockSpec((B, TN), lambda k: (0, k)),
        scratch_shapes=[
            pltpu.VMEM((B, D_in), jnp.float32),                  # x (gathered/lerped)
            pltpu.VMEM((B, D_hid), jnp.float32),                 # h = silu(x@W1+b1)
        ],
    )

    return pl.pallas_call(
        _diffusion_embedding_kernel,
        out_shape=jax.ShapeDtypeStruct((B, D_out), jnp.float32),
        grid_spec=grid_spec,
        compiler_params=pltpu.CompilerParams(
            dimension_semantics=("arbitrary",),                  # sequential: h carried across steps
        ),
        cost_estimate=pl.CostEstimate(
            flops=flops,
            transcendentals=transcendentals,
            bytes_accessed=bytes_accessed,
        ),
    )(low, high, frac, table, w1, b1, w2, b2)


# ----------------------------------------------------------------------------
# Module glue: embedding table build, step -> (low, high, frac), parameter init
# ----------------------------------------------------------------------------
def build_embedding(max_steps):
    # table[s, d] = s * 10 ** (d * 4 / 63),  d in [0, 64)
    steps = jnp.arange(max_steps, dtype=jnp.float32)[:, None]         # [S, 1]
    dims = jnp.arange(64, dtype=jnp.float32)[None, :]                 # [1, 64]
    table = steps * 10.0 ** (dims * 4.0 / 63.0)                       # [S, 64]
    return jnp.concatenate([jnp.sin(table), jnp.cos(table)], axis=1)  # [S, 128]


def init_params(key):
    k1, k2, k3, k4 = jax.random.split(key, 4)
    # nn.Linear default init ~ U(-1/sqrt(fan_in), 1/sqrt(fan_in)); weights pre-transposed.
    lim1 = 1.0 / jnp.sqrt(128.0)
    lim2 = 1.0 / jnp.sqrt(512.0)
    w1 = jax.random.uniform(k1, (128, 512), jnp.float32, -lim1, lim1)
    b1 = jax.random.uniform(k2, (1, 512), jnp.float32, -lim1, lim1)
    w2 = jax.random.uniform(k3, (512, 512), jnp.float32, -lim2, lim2)
    b2 = jax.random.uniform(k4, (1, 512), jnp.float32, -lim2, lim2)
    return w1, b1, w2, b2


def prepare_params(params_f32):
    """Cast weights to bf16 once, outside the kernel; keep biases f32."""
    w1, b1, w2, b2 = params_f32
    return (w1.astype(jnp.bfloat16), b1.astype(jnp.float32),
            w2.astype(jnp.bfloat16), b2.astype(jnp.float32))


def diffusion_embedding_forward(embedding, params, diffusion_step):
    """Reproduces DiffusionEmbedding.forward.

    diffusion_step: [B] integer (table lookup) or float (lerp of table rows).
    Returns [B, 512] float32.
    """
    S = embedding.shape[0]
    if jnp.issubdtype(diffusion_step.dtype, jnp.integer):
        low = diffusion_step.astype(jnp.int32)
        high = low
        frac = jnp.zeros(diffusion_step.shape, jnp.float32)
    else:
        t = diffusion_step.astype(jnp.float32)
        low_f = jnp.floor(t)
        # Clamp indices (TPU gathers clamp silently anyway; this makes it explicit).
        low = jnp.clip(low_f.astype(jnp.int32), 0, S - 1)
        high = jnp.clip(jnp.ceil(t).astype(jnp.int32), 0, S - 1)
        frac = t - low_f
    w1, b1, w2, b2 = params
    return _diffusion_embedding_pallas(low, high, frac,
                                       embedding.astype(jnp.float32),
                                       w1, b1, w2, b2)


# ----------------------------------------------------------------------------
# Pure-JAX references for verification
# ----------------------------------------------------------------------------
def _ref_forward(embedding, params, diffusion_step):
    """Matches kernel numerics when given bf16 weights; pure f32 when given f32."""
    w1, b1, w2, b2 = params
    if jnp.issubdtype(diffusion_step.dtype, jnp.integer):
        x = embedding[diffusion_step]
    else:
        t = diffusion_step
        low_idx = jnp.floor(t).astype(jnp.int32)
        high_idx = jnp.ceil(t).astype(jnp.int32)
        x = embedding[low_idx] + (embedding[high_idx] - embedding[low_idx]) * (
            t - low_idx.astype(t.dtype))[:, None]
    x = x.astype(jnp.float32)
    h = jnp.dot(x.astype(w1.dtype), w1, preferred_element_type=jnp.float32)
    h = h + b1.astype(jnp.float32)
    h = h * jax.nn.sigmoid(h)
    o = jnp.dot(h.astype(w2.dtype), w2, preferred_element_type=jnp.float32)
    o = o + b2.astype(jnp.float32)
    return o * jax.nn.sigmoid(o)


if __name__ == "__main__":
    max_steps = 50
    batch = 8

    key = jax.random.PRNGKey(0)
    k_params, k_step_i, k_step_f = jax.random.split(key, 3)

    embedding = build_embedding(max_steps)          # [50, 128] f32
    params_f32 = init_params(k_params)              # f32 source of truth
    kparams = prepare_params(params_f32)            # bf16 weights, f32 biases

    # Integer diffusion steps (table-lookup path)
    step_int = jax.random.randint(k_step_i, (batch,), 0, max_steps, dtype=jnp.int32)
    out_int = jax.block_until_ready(
        diffusion_embedding_forward(embedding, kparams, step_int))

    # Float diffusion steps (lerp path)
    step_flt = jax.random.uniform(k_step_f, (batch,), jnp.float32, 0.0, max_steps - 1.0)
    out_flt = jax.block_until_ready(
        diffusion_embedding_forward(embedding, kparams, step_flt))

    assert out_int.shape == (batch, 512) and out_flt.shape == (batch, 512)

    # Tight check against a reference using the same bf16 weights / f32 accumulation.
    ref_int_bf = _ref_forward(embedding, kparams, step_int)
    ref_flt_bf = _ref_forward(embedding, kparams, step_flt)
    assert jnp.allclose(out_int, ref_int_bf, atol=5e-3, rtol=5e-3)
    assert jnp.allclose(out_flt, ref_flt_bf, atol=5e-3, rtol=5e-3)

    # Looser sanity check against the pure f32 PyTorch-equivalent reference.
    ref_int_f32 = _ref_forward(embedding, params_f32, step_int)
    ref_flt_f32 = _ref_forward(embedding, params_f32, step_flt)
    assert jnp.allclose(out_int, ref_int_f32, atol=5e-2, rtol=5e-2)
    assert jnp.allclose(out_flt, ref_flt_f32, atol=5e-2, rtol=5e-2)

    print("KERNEL_OK")
</pallas_src>

<mosaic_0001>
module attributes {stable_mosaic.version = 11 : i64} {
  func.func @_diffusion_embedding_kernel(%arg0: i32, %arg1: memref<8xi32, #tpu.memory_space<smem>>, %arg2: memref<8xi32, #tpu.memory_space<smem>>, %arg3: memref<8xf32, #tpu.memory_space<smem>>, %arg4: memref<50x128xf32, #tpu.memory_space<vmem>>, %arg5: memref<128x512xbf16, #tpu.memory_space<vmem>>, %arg6: memref<1x512xf32, #tpu.memory_space<vmem>>, %arg7: memref<512x128xbf16, #tpu.memory_space<vmem>>, %arg8: memref<1x128xf32, #tpu.memory_space<vmem>>, %arg9: memref<8x128xf32, #tpu.memory_space<vmem>>, %arg10: memref<8x128xf32, #tpu.memory_space<vmem>>, %arg11: memref<8x512xf32, #tpu.memory_space<vmem>>) attributes {dimension_semantics = [#tpu.dimension_semantics<arbitrary>], iteration_bounds = array<i64: 4>, scalar_prefetch = 0 : i64, scratch_operands = 2 : i64, tpu.core_type = #tpu.core_type<tc>, window_params = [{transform_indices = @transform_0, window_bounds = array<i64: 8>}, {transform_indices = @transform_1, window_bounds = array<i64: 8>}, {transform_indices = @transform_2, window_bounds = array<i64: 8>}, {pipeline_mode = #tpu.pipeline_mode<synchronous>, transform_indices = @transform_3, window_bounds = array<i64: 50, 128>}, {pipeline_mode = #tpu.pipeline_mode<synchronous>, transform_indices = @transform_4, window_bounds = array<i64: 128, 512>}, {pipeline_mode = #tpu.pipeline_mode<synchronous>, transform_indices = @transform_5, window_bounds = array<i64: 1, 512>}, {transform_indices = @transform_6, window_bounds = array<i64: 512, 128>}, {transform_indices = @transform_7, window_bounds = array<i64: 1, 128>}, {transform_indices = @transform_8, window_bounds = array<i64: 8, 128>}]} {
    %c0_i32 = arith.constant 0 : i32
    %0 = arith.cmpi eq, %arg0, %c0_i32 : i32
    %1 = arith.extui %0 : i1 to i32
    %c0_i32_0 = arith.constant 0 : i32
    %2 = arith.cmpi ne, %1, %c0_i32_0 : i32
    scf.if %2 {
      %c0_9 = arith.constant 0 : index
      %17 = memref.load %arg1[%c0_9] : memref<8xi32, #tpu.memory_space<smem>>
      %18 = arith.index_cast %17 : i32 to index
      %c0_10 = arith.constant 0 : index
      %19 = vector.load %arg4[%18, %c0_10] : memref<50x128xf32, #tpu.memory_space<vmem>>, vector<1x128xf32>
      %c0_11 = arith.constant 0 : index
      %20 = memref.load %arg2[%c0_11] : memref<8xi32, #tpu.memory_space<smem>>
      %21 = arith.index_cast %20 : i32 to index
      %c0_12 = arith.constant 0 : index
      %22 = vector.load %arg4[%21, %c0_12] : memref<50x128xf32, #tpu.memory_space<vmem>>, vector<1x128xf32>
      %23 = arith.subf %22, %19 : vector<1x128xf32>
      %c0_13 = arith.constant 0 : index
      %24 = memref.load %arg3[%c0_13] : memref<8xf32, #tpu.memory_space<smem>>
      %25 = vector.broadcast %24 : f32 to vector<1x128xf32>
      %26 = arith.mulf %23, %25 : vector<1x128xf32>
      %27 = arith.addf %19, %26 : vector<1x128xf32>
      %c0_14 = arith.constant 0 : index
      %c0_15 = arith.constant 0 : index
      %28 = vector.load %arg10[%c0_14, %c0_15] : memref<8x128xf32, #tpu.memory_space<vmem>>, vector<1x128xf32>
      tpu.vector_store %arg10[%c0_14, %c0_15], %27 {strides = array<i32>} : memref<8x128xf32, #tpu.memory_space<vmem>>, vector<1x128xf32>,
      %c1 = arith.constant 1 : index
      %29 = memref.load %arg1[%c1] : memref<8xi32, #tpu.memory_space<smem>>
      %30 = arith.index_cast %29 : i32 to index
      %c0_16 = arith.constant 0 : index
      %31 = vector.load %arg4[%30, %c0_16] : memref<50x128xf32, #tpu.memory_space<vmem>>, vector<1x128xf32>
      %c1_17 = arith.constant 1 : index
      %32 = memref.load %arg2[%c1_17] : memref<8xi32, #tpu.memory_space<smem>>
      %33 = arith.index_cast %32 : i32 to index
      %c0_18 = arith.constant 0 : index
      %34 = vector.load %arg4[%33, %c0_18] : memref<50x128xf32, #tpu.memory_space<vmem>>, vector<1x128xf32>
      %35 = arith.subf %34, %31 : vector<1x128xf32>
      %c1_19 = arith.constant 1 : index
      %36 = memref.load %arg3[%c1_19] : memref<8xf32, #tpu.memory_space<smem>>
      %37 = vector.broadcast %36 : f32 to vector<1x128xf32>
      %38 = arith.mulf %35, %37 : vector<1x128xf32>
      %39 = arith.addf %31, %38 : vector<1x128xf32>
      %c1_20 = arith.constant 1 : index
      %c0_21 = arith.constant 0 : index
      %40 = vector.load %arg10[%c1_20, %c0_21] : memref<8x128xf32, #tpu.memory_space<vmem>>, vector<1x128xf32>
      tpu.vector_store %arg10[%c1_20, %c0_21], %39 {strides = array<i32>} : memref<8x128xf32, #tpu.memory_space<vmem>>, vector<1x128xf32>,
      %c2 = arith.constant 2 : index
      %41 = memref.load %arg1[%c2] : memref<8xi32, #tpu.memory_space<smem>>
      %42 = arith.index_cast %41 : i32 to index
      %c0_22 = arith.constant 0 : index
      %43 = vector.load %arg4[%42, %c0_22] : memref<50x128xf32, #tpu.memory_space<vmem>>, vector<1x128xf32>
      %c2_23 = arith.constant 2 : index
      %44 = memref.load %arg2[%c2_23] : memref<8xi32, #tpu.memory_space<smem>>
      %45 = arith.index_cast %44 : i32 to index
      %c0_24 = arith.constant 0 : index
      %46 = vector.load %arg4[%45, %c0_24] : memref<50x128xf32, #tpu.memory_space<vmem>>, vector<1x128xf32>
      %47 = arith.subf %46, %43 : vector<1x128xf32>
      %c2_25 = arith.constant 2 : index
      %48 = memref.load %arg3[%c2_25] : memref<8xf32, #tpu.memory_space<smem>>
      %49 = vector.broadcast %48 : f32 to vector<1x128xf32>
      %50 = arith.mulf %47, %49 : vector<1x128xf32>
      %51 = arith.addf %43, %50 : vector<1x128xf32>
      %c2_26 = arith.constant 2 : index
      %c0_27 = arith.constant 0 : index
      %52 = vector.load %arg10[%c2_26, %c0_27] : memref<8x128xf32, #tpu.memory_space<vmem>>, vector<1x128xf32>
      tpu.vector_store %arg10[%c2_26, %c0_27], %51 {strides = array<i32>} : memref<8x128xf32, #tpu.memory_space<vmem>>, vector<1x128xf32>,
      %c3 = arith.constant 3 : index
      %53 = memref.load %arg1[%c3] : memref<8xi32, #tpu.memory_space<smem>>
      %54 = arith.index_cast %53 : i32 to index
      %c0_28 = arith.constant 0 : index
      %55 = vector.load %arg4[%54, %c0_28] : memref<50x128xf32, #tpu.memory_space<vmem>>, vector<1x128xf32>
      %c3_29 = arith.constant 3 : index
      %56 = memref.load %arg2[%c3_29] : memref<8xi32, #tpu.memory_space<smem>>
      %57 = arith.index_cast %56 : i32 to index
      %c0_30 = arith.constant 0 : index
      %58 = vector.load %arg4[%57, %c0_30] : memref<50x128xf32, #tpu.memory_space<vmem>>, vector<1x128xf32>
      %59 = arith.subf %58, %55 : vector<1x128xf32>
      %c3_31 = arith.constant 3 : index
      %60 = memref.load %arg3[%c3_31] : memref<8xf32, #tpu.memory_space<smem>>
      %61 = vector.broadcast %60 : f32 to vector<1x128xf32>
      %62 = arith.mulf %59, %61 : vector<1x128xf32>
      %63 = arith.addf %55, %62 : vector<1x128xf32>
      %c3_32 = arith.constant 3 : index
      %c0_33 = arith.constant 0 : index
      %64 = vector.load %arg10[%c3_32, %c0_33] : memref<8x128xf32, #tpu.memory_space<vmem>>, vector<1x128xf32>
      tpu.vector_store %arg10[%c3_32, %c0_33], %63 {strides = array<i32>} : memref<8x128xf32, #tpu.memory_space<vmem>>, vector<1x128xf32>,
      %c4 = arith.constant 4 : index
      %65 = memref.load %arg1[%c4] : memref<8xi32, #tpu.memory_space<smem>>
      %66 = arith.index_cast %65 : i32 to index
      %c0_34 = arith.constant 0 : index
      %67 = vector.load %arg4[%66, %c0_34] : memref<50x128xf32, #tpu.memory_space<vmem>>, vector<1x128xf32>
      %c4_35 = arith.constant 4 : index
      %68 = memref.load %arg2[%c4_35] : memref<8xi32, #tpu.memory_space<smem>>
      %69 = arith.index_cast %68 : i32 to index
      %c0_36 = arith.constant 0 : index
      %70 = vector.load %arg4[%69, %c0_36] : memref<50x128xf32, #tpu.memory_space<vmem>>, vector<1x128xf32>
      %71 = arith.subf %70, %67 : vector<1x128xf32>
      %c4_37 = arith.constant 4 : index
      %72 = memref.load %arg3[%c4_37] : memref<8xf32, #tpu.memory_space<smem>>
      %73 = vector.broadcast %72 : f32 to vector<1x128xf32>
      %74 = arith.mulf %71, %73 : vector<1x128xf32>
      %75 = arith.addf %67, %74 : vector<1x128xf32>
      %c4_38 = arith.constant 4 : index
      %c0_39 = arith.constant 0 : index
      %76 = vector.load %arg10[%c4_38, %c0_39] : memref<8x128xf32, #tpu.memory_space<vmem>>, vector<1x128xf32>
      tpu.vector_store %arg10[%c4_38, %c0_39], %75 {strides = array<i32>} : memref<8x128xf32, #tpu.memory_space<vmem>>, vector<1x128xf32>,
      %c5 = arith.constant 5 : index
      %77 = memref.load %arg1[%c5] : memref<8xi32, #tpu.memory_space<smem>>
      %78 = arith.index_cast %77 : i32 to index
      %c0_40 = arith.constant 0 : index
      %79 = vector.load %arg4[%78, %c0_40] : memref<50x128xf32, #tpu.memory_space<vmem>>, vector<1x128xf32>
      %c5_41 = arith.constant 5 : index
      %80 = memref.load %arg2[%c5_41] : memref<8xi32, #tpu.memory_space<smem>>
      %81 = arith.index_cast %80 : i32 to index
      %c0_42 = arith.constant 0 : index
      %82 = vector.load %arg4[%81, %c0_42] : memref<50x128xf32, #tpu.memory_space<vmem>>, vector<1x128xf32>
      %83 = arith.subf %82, %79 : vector<1x128xf32>
      %c5_43 = arith.constant 5 : index
      %84 = memref.load %arg3[%c5_43] : memref<8xf32, #tpu.memory_space<smem>>
      %85 = vector.broadcast %84 : f32 to vector<1x128xf32>
      %86 = arith.mulf %83, %85 : vector<1x128xf32>
      %87 = arith.addf %79, %86 : vector<1x128xf32>
      %c5_44 = arith.constant 5 : index
      %c0_45 = arith.constant 0 : index
      %88 = vector.load %arg10[%c5_44, %c0_45] : memref<8x128xf32, #tpu.memory_space<vmem>>, vector<1x128xf32>
      tpu.vector_store %arg10[%c5_44, %c0_45], %87 {strides = array<i32>} : memref<8x128xf32, #tpu.memory_space<vmem>>, vector<1x128xf32>,
      %c6 = arith.constant 6 : index
      %89 = memref.load %arg1[%c6] : memref<8xi32, #tpu.memory_space<smem>>
      %90 = arith.index_cast %89 : i32 to index
      %c0_46 = arith.constant 0 : index
      %91 = vector.load %arg4[%90, %c0_46] : memref<50x128xf32, #tpu.memory_space<vmem>>, vector<1x128xf32>
      %c6_47 = arith.constant 6 : index
      %92 = memref.load %arg2[%c6_47] : memref<8xi32, #tpu.memory_space<smem>>
      %93 = arith.index_cast %92 : i32 to index
      %c0_48 = arith.constant 0 : index
      %94 = vector.load %arg4[%93, %c0_48] : memref<50x128xf32, #tpu.memory_space<vmem>>, vector<1x128xf32>
      %95 = arith.subf %94, %91 : vector<1x128xf32>
      %c6_49 = arith.constant 6 : index
      %96 = memref.load %arg3[%c6_49] : memref<8xf32, #tpu.memory_space<smem>>
      %97 = vector.broadcast %96 : f32 to vector<1x128xf32>
      %98 = arith.mulf %95, %97 : vector<1x128xf32>
      %99 = arith.addf %91, %98 : vector<1x128xf32>
      %c6_50 = arith.constant 6 : index
      %c0_51 = arith.constant 0 : index
      %100 = vector.load %arg10[%c6_50, %c0_51] : memref<8x128xf32, #tpu.memory_space<vmem>>, vector<1x128xf32>
      tpu.vector_store %arg10[%c6_50, %c0_51], %99 {strides = array<i32>} : memref<8x128xf32, #tpu.memory_space<vmem>>, vector<1x128xf32>,
      %c7 = arith.constant 7 : index
      %101 = memref.load %arg1[%c7] : memref<8xi32, #tpu.memory_space<smem>>
      %102 = arith.index_cast %101 : i32 to index
      %c0_52 = arith.constant 0 : index
      %103 = vector.load %arg4[%102, %c0_52] : memref<50x128xf32, #tpu.memory_space<vmem>>, vector<1x128xf32>
      %c7_53 = arith.constant 7 : index
      %104 = memref.load %arg2[%c7_53] : memref<8xi32, #tpu.memory_space<smem>>
      %105 = arith.index_cast %104 : i32 to index
      %c0_54 = arith.constant 0 : index
      %106 = vector.load %arg4[%105, %c0_54] : memref<50x128xf32, #tpu.memory_space<vmem>>, vector<1x128xf32>
      %107 = arith.subf %106, %103 : vector<1x128xf32>
      %c7_55 = arith.constant 7 : index
      %108 = memref.load %arg3[%c7_55] : memref<8xf32, #tpu.memory_space<smem>>
      %109 = vector.broadcast %108 : f32 to vector<1x128xf32>
      %110 = arith.mulf %107, %109 : vector<1x128xf32>
      %111 = arith.addf %103, %110 : vector<1x128xf32>
      %c7_56 = arith.constant 7 : index
      %c0_57 = arith.constant 0 : index
      %112 = vector.load %arg10[%c7_56, %c0_57] : memref<8x128xf32, #tpu.memory_space<vmem>>, vector<1x128xf32>
      tpu.vector_store %arg10[%c7_56, %c0_57], %111 {strides = array<i32>} : memref<8x128xf32, #tpu.memory_space<vmem>>, vector<1x128xf32>,
      %c0_58 = arith.constant 0 : index
      %c0_59 = arith.constant 0 : index
      %113 = vector.load %arg10[%c0_58, %c0_59] : memref<8x128xf32, #tpu.memory_space<vmem>>, vector<8x128xf32>
      %114 = arith.truncf %113 : vector<8x128xf32> to vector<8x128xbf16>
      %c0_60 = arith.constant 0 : index
      %c0_61 = arith.constant 0 : index
      %115 = vector.load %arg5[%c0_60, %c0_61] : memref<128x512xbf16, #tpu.memory_space<vmem>>, vector<128x512xbf16>
      %cst_62 = arith.constant dense<0.000000e+00> : vector<8x512xf32>
      %116 = tpu.matmul %114, %115, %cst_62 {dimension_numbers = #tpu.dot_dimension_numbers<[1], [0], [0], [1], [0, 0, 1, 1], [], []>} : vector<8x128xbf16>, vector<128x512xbf16>, vector<8x512xf32> -> vector<8x512xf32>
      %c0_63 = arith.constant 0 : index
      %c0_64 = arith.constant 0 : index
      %117 = vector.load %arg6[%c0_63, %c0_64] : memref<1x512xf32, #tpu.memory_space<vmem>>, vector<1x512xf32>
      %118 = vector.broadcast %117 : vector<1x512xf32> to vector<8x512xf32>
      %119 = arith.addf %116, %118 : vector<8x512xf32>
      %120 = arith.negf %119 : vector<8x512xf32>
      %121 = math.exp %120 : vector<8x512xf32>
      %cst_65 = arith.constant 1.000000e+00 : f32
      %122 = vector.broadcast %cst_65 : f32 to vector<8x512xf32>
      %123 = arith.addf %122, %121 : vector<8x512xf32>
      %124 = arith.divf %122, %123 : vector<8x512xf32>
      %125 = arith.mulf %119, %124 : vector<8x512xf32>
      %c0_66 = arith.constant 0 : index
      %c0_67 = arith.constant 0 : index
      %126 = vector.load %arg11[%c0_66, %c0_67] : memref<8x512xf32, #tpu.memory_space<vmem>>, vector<8x512xf32>
      tpu.vector_store %arg11[%c0_66, %c0_67], %125 {strides = array<i32>} : memref<8x512xf32, #tpu.memory_space<vmem>>, vector<8x512xf32>,
    } else {
    }
    %c0 = arith.constant 0 : index
    %c0_1 = arith.constant 0 : index
    %3 = vector.load %arg11[%c0, %c0_1] : memref<8x512xf32, #tpu.memory_space<vmem>>, vector<8x512xf32>
    %4 = arith.truncf %3 : vector<8x512xf32> to vector<8x512xbf16>
    %c0_2 = arith.constant 0 : index
    %c0_3 = arith.constant 0 : index
    %5 = vector.load %arg7[%c0_2, %c0_3] : memref<512x128xbf16, #tpu.memory_space<vmem>>, vector<512x128xbf16>
    %cst = arith.constant dense<0.000000e+00> : vector<8x128xf32>
    %6 = tpu.matmul %4, %5, %cst {dimension_numbers = #tpu.dot_dimension_numbers<[1], [0], [0], [1], [0, 0, 1, 1], [], []>} : vector<8x512xbf16>, vector<512x128xbf16>, vector<8x128xf32> -> vector<8x128xf32>
    %c0_4 = arith.constant 0 : index
    %c0_5 = arith.constant 0 : index
    %7 = vector.load %arg8[%c0_4, %c0_5] : memref<1x128xf32, #tpu.memory_space<vmem>>, vector<1x128xf32>
    %8 = vector.broadcast %7 : vector<1x128xf32> to vector<8x128xf32>
    %9 = arith.addf %6, %8 : vector<8x128xf32>
    %10 = arith.negf %9 : vector<8x128xf32>
    %11 = math.exp %10 : vector<8x128xf32>
    %cst_6 = arith.constant 1.000000e+00 : f32
    %12 = vector.broadcast %cst_6 : f32 to vector<8x128xf32>
    %13 = arith.addf %12, %11 : vector<8x128xf32>
    %14 = arith.divf %12, %13 : vector<8x128xf32>
    %15 = arith.mulf %9, %14 : vector<8x128xf32>
    %c0_7 = arith.constant 0 : index
    %c0_8 = arith.constant 0 : index
    %16 = vector.load %arg9[%c0_7, %c0_8] : memref<8x128xf32, #tpu.memory_space<vmem>>, vector<8x128xf32>
    tpu.vector_store %arg9[%c0_7, %c0_8], %15 {strides = array<i32>} : memref<8x128xf32, #tpu.memory_space<vmem>>, vector<8x128xf32>,
    return
  }
  func.func @transform_0(%arg0: i32) -> i32 {
    %c0_i32 = arith.constant 0 : i32
    %c0_i32_0 = arith.constant 0 : i32
    return %c0_i32 : i32
  }
  func.func @transform_1(%arg0: i32) -> i32 {
    %c0_i32 = arith.constant 0 : i32
    %c0_i32_0 = arith.constant 0 : i32
    return %c0_i32 : i32
  }
  func.func @transform_2(%arg0: i32) -> i32 {
    %c0_i32 = arith.constant 0 : i32
    %c0_i32_0 = arith.constant 0 : i32
    return %c0_i32 : i32
  }
  func.func @transform_3(%arg0: i32) -> (i32, i32) {
    %c0_i32 = arith.constant 0 : i32
    %c0_i32_0 = arith.constant 0 : i32
    %c0_i32_1 = arith.constant 0 : i32
    return %c0_i32, %c0_i32_0 : i32, i32
  }
  func.func @transform_4(%arg0: i32) -> (i32, i32) {
    %c0_i32 = arith.constant 0 : i32
    %c0_i32_0 = arith.constant 0 : i32
    %c0_i32_1 = arith.constant 0 : i32
    return %c0_i32, %c0_i32_0 : i32, i32
  }
  func.func @transform_5(%arg0: i32) -> (i32, i32) {
    %c0_i32 = arith.constant 0 : i32
    %c0_i32_0 = arith.constant 0 : i32
    %c0_i32_1 = arith.constant 0 : i32
    return %c0_i32, %c0_i32_0 : i32, i32
  }
  func.func @transform_6(%arg0: i32) -> (i32, i32) {
    %c0_i32 = arith.constant 0 : i32
    %c0_i32_0 = arith.constant 0 : i32
    return %c0_i32, %arg0 : i32, i32
  }
  func.func @transform_7(%arg0: i32) -> (i32, i32) {
    %c0_i32 = arith.constant 0 : i32
    %c0_i32_0 = arith.constant 0 : i32
    return %c0_i32, %arg0 : i32, i32
  }
  func.func @transform_8(%arg0: i32) -> (i32, i32) {
    %c0_i32 = arith.constant 0 : i32
    %c0_i32_0 = arith.constant 0 : i32
    return %c0_i32, %arg0 : i32, i32
  }
}

</mosaic_0001>

<bundles_post_ra>
// kernel: tpu_custom_call.1
= control target key start
LH: loop header
LB: loop body
LE: loop exit
PB: predicated region body
PF: predicated region fallthrough
CT: control target
= control target key end

     0   :  { %s2492_s0 = inlined_call_operand.hbm [shape: s32[8], index: 0, kind: input, shape index: {}]   ;;  %s2493_s1 = inlined_call_operand.hbm [shape: s32[8], index: 1, kind: input, shape index: {}]   ;;  %s2494_s2 = inlined_call_operand.hbm [shape: f32[8], index: 2, kind: input, shape index: {}]   ;;  %s2495_s3 = inlined_call_operand.hbm [shape: f32[50,128], index: 3, kind: input, shape index: {}]   ;;  %s2496_s4 = inlined_call_operand.hbm [shape: bf16[128,512], index: 4, kind: input, shape index: {}]   ;;  %s2497_s5 = inlined_call_operand.vmem [shape: f32[1,512], index: 5, kind: input, shape index: {}]   ;;  %s2498_s6 = inlined_call_operand.hbm [shape: bf16[512,512], index: 6, kind: input, shape index: {}]   ;;  %s2499_s7 = inlined_call_operand.hbm [shape: f32[1,512], index: 7, kind: input, shape index: {}]   ;;  %s2500_s8 = inlined_call_operand.hbm [shape: f32[8,512], index: 8, kind: output, shape index: {}]  }
   0x1   :  { %2506 = sst [smem:[#allocation26_spill]] %s2492_s0 }
   0x2   :  { %2507 = sst [smem:[#allocation27_spill]] %s2493_s1 }
   0x3   :  { %2508 = sst [smem:[#allocation28_spill]] %s2494_s2 }
   0x4   :  { %2509 = sst [smem:[#allocation29_spill]] %s2495_s3 }
   0x5   :  { %13 = vsyncpa [#allocation7], 0 }
   0x6   :  { %14 = vsyncpa [#allocation9], 0 }
   0x7   :  { %15 = vsyncpa [#allocation5], 0 }
   0x8   :  { %16 = vsyncpa [#allocation13], 0 }
   0x9   :  { %17 = vsyncpa [#allocation6], 0 }
   0xa   :  { %19 = vsyncpa [#allocation6 + $0x1], 0  ;;  %s2179_s27 = smov 0   ;;  %s2181_s28 = smov 0  }
   0xb   :  { %s2183_s29 = smov 0   ;;  %s2185_s30 = smov 0  }
   0xc LB: > { %s2200_s9 = sadd.s32 4294967295, %s2121_s30   ;;  %s1376_s10 = sadd.s32 4294967294, %s2121_s30   ;;  %s2121_s30 = sphi %s2185_s30, %s2535_s30   ;;  %s2117_s29 = sphi %s2183_s29, %s2539_s29   ;;  %s2113_s28 = sphi %s2181_s28, %s2538_s28   ;;  %s2109_s27 = sphi %s2179_s27, %s2537_s27  }
   0xd   : > { %p171_p0 = scmp.ne.s32.totalorder %s2113_s28, %s2109_s27  ;;  %p2505_p1 = scmp.eq.s32.totalorder %s2200_s9, 0 }
   0xe   : > { %p221_p2 = scmp.eq.s32.totalorder %s2200_s9, 3  ;;  %p227_p3 = scmp.eq.s32.totalorder %s1376_s10, 3 }
   0xf   : > { %p2209_p4 = por %p2505_p1, %p171_p0  ;;  %p1377_p5 = scmp.ge.s32.totalorder %s2121_s30, 1 }
  0x10   : > { %p2214_p6 = por %p227_p3, %p171_p0  ;;  %p234_p7 = scmp.lt.s32.totalorder %s2121_s30, 5 }
  0x11   : > { %s2513_s3 = sld [smem:[#allocation29_spill]]  ;;  %s2123_s17 = smov [#allocation11]  }
  0x12   : > { %s2511_s12 = scalar_select %p2214_p6, 1, 0 }
  0x13   : > { %p2223_p9 = pnand %p1377_p5, %p234_p7  ;;  %s277_s18 = sshll.u32 %s2123_s17, 4  ;;  %s278_s18 = int_to_ptr.vmem [resolvable:$true] %s277_s18 }
  0x14   : > { %2512 = sst [smem:[#allocation23_spill]] %s2511_s12  ;;  %s2124_s23 = smov 128  }
  0x15   : > { %p1771_p10 = pneg %p2223_p9  ;;  %s2516_s1 = sld [smem:[#allocation27_spill]] }
  0x16   : > { %s2125_s24 = smov 8   ;;  %s2126_s25 = smov [#allocation8]  }
  0x17   : > { %s275_s15 = sshll.u32 %s2513_s3, 4  ;;  %p2231_p11 = pnand %p1771_p10, %p2505_p1  ;;  %s276_s15 = int_to_ptr.hbm [resolvable:$true] %s275_s15 }
  0x18   : > { %s2243_s26 = sadd.s32 1, %s2121_s30   ;;  %s158_s13 = sadd.s32 1, %s2117_s29 }
  0x19   : > { %1783 = dma.hbm_to_vmem [thread:$0]  (!%p2231_p11), %s276_s15, 896, %s278_s18, [#allocation5], %s2124_s23, %s2124_s23, %s2125_s24  }
  0x1a   : > { %2517 = sst [smem:[#allocation24_spill]] %s2243_s26  ;;  %s155_s10 = ssub.s32 %s2121_s30, %s2243_s26 }
  0x1b   : > { %s256_s22 = sshll.u32 %s2516_s1, 4  ;;  %p156_p12 = scmp.eq.s32.totalorder %s155_s10, 0  ;;  %s257_s22 = int_to_ptr.hbm [resolvable:$true] %s256_s22 }
  0x1c   : > { %1777 = dma.hbm_to_smem (!%p2231_p11), %s257_s22, 16, %s2126_s25, [#allocation9]  }
  0x1d   : > { %p165_p13 = scmp.ne.s32.totalorder %s2117_s29, %s2113_s28  ;;  %p166_p0 = scmp.eq.s32.totalorder %s2121_s30, 0 }
  0x1e   : > { %s2252_s14 = scalar_select %p156_p12, %s2117_s29, %s158_s13  }
  0x1f   : > { %p2254_p3 = por %p166_p0, %p165_p13  ;;  %p2260_p5 = por %p221_p2, %p165_p13 }
  0x20   : > { %2518 = sst [smem:[#allocation25_spill]] %s2252_s14  ;;  %p1803_p7 = scmp.lt.s32.totalorder %s2121_s30, 4 }
  0x21   : > { %s308_s18 = sand.u32 1, %s2121_s30   ;;  %s2503_s20 = sand.u32 1, %s2117_s29  }
  0x22   : > { %s1384_s21 = sshll.u32 %s2503_s20, 8  ;;  %s1385_s22 = sshll.u32 %s2121_s30, 2 }
  0x23   : > { %s316_s25 = scalar_lea.hbm %s2498_s6, %s1385_s22  ;;  %s312_s10 = scalar_lea.vmem [#allocation14], %s1384_s21 }
  0x24   : > { %s319_s13 = sshll.u32 %s312_s10, 4  ;;  %s317_s1 = sshll.u32 %s316_s25, 4  ;;  %s320_s13 = int_to_ptr.vmem [resolvable:$true] %s319_s13  ;;  %s318_s1 = int_to_ptr.hbm [resolvable:$true] %s317_s1 }
  0x25   : > { %p2275_p2 = pnand %p1803_p7, %p2254_p3  ;;  %s2522_s0 = sld [smem:[#allocation26_spill]] }
  0x26   : > { %s2282_s12 = scalar_lea.sflag [#allocation5], %s308_s18  ;;  %s1919_s23 = sshra.s32 %s318_s1, 4  ;;  %s1920_s23 = int_to_ptr.hbm [resolvable:$true] %s1919_s23 }
  0x27   : > { %s1921_s21 = scalar_lea.hbm %s1920_s23, 256  ;;  %p1923_p12 = pneg %p2275_p2 }
  0x28   : > { %p1922_p10 = scmp.ne.s32.totalorder %s1920_s23, %s1921_s21  ;;  %s1926_s24 = scalar_lea.hbm %s2498_s6, 1024 }
  0x29   : > { %p1927_p3 = scmp.lt.s32.totalorder %s1920_s23, %s2498_s6  ;;  %p1928_p7 = scmp.lt.s32.totalorder %s1926_s24, %s1921_s21 }
  0x2a   : > { %p1924_p13 = pnand %p1923_p12, %p1922_p10 }
  0x2b   : > { %s246_s20 = sshll.u32 %s2522_s0, 4  ;;  %p1929_p8 = por %p1928_p7, %p1927_p3  ;;  %s247_s20 = int_to_ptr.hbm [resolvable:$true] %s246_s20 }
  0x2c   : > { %p1925_p0 = pneg %p1924_p13 }
  0x2e   : > { %p1930_p1 = pnand %p1929_p8, %p1925_p0 }
  0x30   : > { %1933 = shalt.err (!%p1930_p1)
}
  0x31   : > { %s2127_s18 = smov 256   ;;  %s2128_s25 = smov 64  }
  0x32   : > { %s2129_s10 = smov 4   ;;  %s2130_s17 = smov [#allocation4]  }
  0x33   : > { %1790 = dma.hbm_to_vmem [thread:$0]  (!%p2275_p2), %s318_s1, 4096, %s320_s13, %s2282_s12, %s2127_s18, %s2128_s25, %s2129_s10  }
  0x34   : > { %1774 = dma.hbm_to_smem (!%p2231_p11), %s247_s20, 16, %s2130_s17, [#allocation7]  }
  0x35   : > { %s2523_s2 = sld [smem:[#allocation28_spill]]  ;;  %s289_s14 = sshll.u32 %s2496_s4, 4  ;;  %s290_s14 = int_to_ptr.hbm [resolvable:$true] %s289_s14 }
  0x36   : > { %s2131_s0 = smov [#allocation10]   ;;  %s2132_s1 = smov [#allocation12]  }
  0x37   : > { %s291_s13 = sshll.u32 %s2132_s1, 4  ;;  %s2133_s25 = smov 16   ;;  %s292_s13 = int_to_ptr.vmem [resolvable:$true] %s291_s13 }
  0x38   : > { %1786 = dma.hbm_to_vmem [thread:$0]  (!%p2231_p11), %s290_s14, 4096, %s292_s13, [#allocation13], %s2127_s18, %s2127_s18, %s2133_s25  }
  0x39   : > { %s335_s17 = scalar_lea.hbm %s2499_s7, %s2121_s30  ;;  %s2524_s23 = sand.u32 1, %s2117_s29  }
  0x3a   : > { %s332_s21 = scalar_lea.vmem [#allocation15], %s2524_s23  ;;  %s337_s24 = sshll.u32 %s335_s17, 4  ;;  %s338_s24 = int_to_ptr.hbm [resolvable:$true] %s337_s24 }
  0x3b   : > { %s266_s22 = sshll.u32 %s2523_s2, 4  ;;  %s339_s2 = sshll.u32 %s332_s21, 4  ;;  %s267_s22 = int_to_ptr.hbm [resolvable:$true] %s266_s22  ;;  %s340_s2 = int_to_ptr.vmem [resolvable:$true] %s339_s2 }
  0x3c   : > { %1780 = dma.hbm_to_smem (!%p2231_p11), %s267_s22, 16, %s2131_s0, [#allocation9]  }
  0x3d   : > { %s2009_s26 = sshra.s32 %s338_s24, 4  ;;  %s2016_s22 = scalar_lea.hbm %s2499_s7, 4  ;;  %s2010_s26 = int_to_ptr.hbm [resolvable:$true] %s2009_s26 }
  0x3e   : > { %s2011_s0 = scalar_lea.hbm %s2010_s26, 1  ;;  %p2017_p11 = scmp.lt.s32.totalorder %s2010_s26, %s2499_s7 }
  0x3f   : > { %p2012_p1 = scmp.ne.s32.totalorder %s2010_s26, %s2011_s0  ;;  %p2018_p13 = scmp.lt.s32.totalorder %s2016_s22, %s2011_s0 }
  0x41   : > { %p2014_p8 = pnand %p2012_p1, %p1923_p12  ;;  %p2019_p0 = por %p2018_p13, %p2017_p11 }
  0x43   : > { %p2015_p10 = pneg %p2014_p8 }
  0x45   : > { %p2020_p3 = pnand %p2019_p0, %p2015_p10 }
  0x47   : > { %2023 = shalt.err (!%p2020_p3)
}
  0x48   : > { %1793 = dma.hbm_to_vmem [thread:$0]  (!%p2275_p2), %s338_s24, 16, %s340_s2, %s2282_s12  }
  0x49   : > { %348 = sbr.rel (%p2223_p9) target bundleno = 533 (0x215), region = 52  ;;  %p2525_p12 = scmp.eq.s32.totalorder (!%p2223_p9), %s2200_s9, 0 }
  0x4e   : > { %2084 = dma.done.wait (%p2525_p12), [#allocation7], 16   ;;  %p2526_p7 = pmov %p2525_p12 }
  0x50   : > { %2086 = vsyncadd (%p2526_p7), [#allocation7], 4294967280  ;;  %p2527_p1 = pmov %p2526_p7 }
  0x52   : > { %2088 = dma.done.wait (%p2527_p1), [#allocation9], 32   ;;  %p2528_p8 = pmov %p2527_p1 }
  0x53   : > { %p2529_p10 = pmov %p2527_p1 }
  0x54   : > { %2090 = vsyncadd (%p2528_p8), [#allocation9], 4294967264 }
  0x55   : > { %2092 = dma.done.wait (%p2529_p10), [#allocation5], 896   ;;  %p2530_p2 = pmov %p2527_p1 }
  0x56   : > { %p2531_p9 = pmov %p2527_p1 }
  0x57   : > { %2094 = vsyncadd (%p2530_p2), [#allocation5], 4294966400 }
  0x58   : > { %2096 = dma.done.wait (%p2531_p9), [#allocation13], 4096   ;;  %p2532_p11 = pmov %p2527_p1 }
  0x59   : > { %s375_s2 = sand.u32 1, %s2200_s9   ;;  %s2348_s3 = sand.u32 1, %s2113_s28  }
  0x5a   : > { %2098 = vsyncadd (%p2532_p11), [#allocation13], 4294963200  ;;  %s1392_s12 = sshll.u32 %s2348_s3, 8  ;;  %s376_s16 = scalar_lea.sflag [#allocation5], %s375_s2 }
  0x5b   : > { %s2351_s13 = scalar_lea.vmem [#allocation14], %s1392_s12 }
  0x5c   : > { %2100 = dma.done.wait (%p2209_p4), %s376_s16, 4112  }
  0x5d   : > { %2102 = vsyncadd (%p2209_p4), %s376_s16, 4294963184  ;;  %s388_s25 = scalar_lea.vmem [#allocation15], %s2348_s3 }
  0x5e   : > { %394 = sfence }
  0x5f   : > { %s1393_s20 = sshll.u32 %s2348_s3, 3  ;;  %p2533_p13 = scmp.ne.s32.totalorder %s2200_s9, 0 }
  0x60   : > { %s2359_s10 = scalar_lea.vmem [#allocation16], %s1393_s20  ;;  %s2363_s11 = sld [smem:[#allocation4]] (!%p2533_p13) }
  0x61   : > { %430 = sbr.rel (%p2533_p13) target bundleno = 330 (0x14a), region = 84  ;;  %s2365_s17 = sld [smem:[#allocation8]] (!%p2533_p13) }
  0x62   : > { %s2367_s23 = sld [smem:[#allocation10]] (!%p2533_p13) }
  0x63   : > { %s2369_s21 = sld [smem:[#allocation4 + $0x1]] (!%p2533_p13) }
  0x64   : > { %s2371_s24 = sld [smem:[#allocation8 + $0x1]] (!%p2533_p13) }
  0x65   : > { %s2373_s26 = sld [smem:[#allocation10 + $0x1]] (!%p2533_p13) }
  0x66   : > { %v1530_v0 = vld [vmem:[#allocation12 + $0xe0] sm:$0xf]  ;;  %v1711_v1 = vld [vmem:[#allocation12 + $0xec] sm:$0xf0]  ;;  %v1709_v2 = vld [vmem:[#allocation12 + $0xe4] sm:$0xf] }
  0x67   : > { %v1531_v3 = vor.u32 %v1711_v1, %v1530_v0  ;;  %v1532_v4 = vld [vmem:[#allocation12 + $0xf0] sm:$0xf0]  ;;  %v1538_v5 = vld [vmem:[#allocation12 + $0xe8] sm:$0xf]  ;;  %v1712_v6 = vld [vmem:[#allocation12 + $0xf4] sm:$0xf0] }
  0x68   : > { %v1535_v7 = vor.u32 %v1709_v2, %v1532_v4  ;;  %v1539_v8 = vor.u32 %v1712_v6, %v1538_v5  ;;  %v1710_v9 = vld [vmem:[#allocation12 + $0xec] sm:$0xf]  ;;  %v1540_v10 = vld [vmem:[#allocation12 + $0xf8] sm:$0xf0]  ;;  %v1514_v11 = vld [vmem:[#allocation12 + $0xc0] sm:$0xf] }
  0x69   : > { %731 = vmatpush.bf16.msra.mxu0 %v1531_v3  ;;  %v1543_v12 = vor.u32 %v1710_v9, %v1540_v10  ;;  %v1707_v13 = vld [vmem:[#allocation12 + $0xcc] sm:$0xf0]  ;;  %v1705_v14 = vld [vmem:[#allocation12 + $0xc4] sm:$0xf]  ;;  %v1516_v15 = vld [vmem:[#allocation12 + $0xd0] sm:$0xf0] }
  0x6a   : > { %744 = vmatpush.bf16.msra.mxu1 %v1535_v7  ;;  %757 = vmatpush.bf16.msra.mxu2 %v1539_v8  ;;  %v1515_v16 = vor.u32 %v1707_v13, %v1514_v11  ;;  %v1519_v17 = vor.u32 %v1705_v14, %v1516_v15  ;;  %v1522_v18 = vld [vmem:[#allocation12 + $0xc8] sm:$0xf]  ;;  %v1708_v19 = vld [vmem:[#allocation12 + $0xd4] sm:$0xf0]  ;;  %v1706_v20 = vld [vmem:[#allocation12 + $0xcc] sm:$0xf] }
  0x6b   : > { %770 = vmatpush.bf16.msra.mxu3 %v1543_v12  ;;  %v1523_v21 = vor.u32 %v1708_v19, %v1522_v18  ;;  %v1524_v22 = vld [vmem:[#allocation12 + $0xd8] sm:$0xf0]  ;;  %v1498_v23 = vld [vmem:[#allocation12 + $0xa0] sm:$0xf]  ;;  %v1703_v24 = vld [vmem:[#allocation12 + $0xac] sm:$0xf0] }
  0x6c   : > { %v1527_v25 = vor.u32 %v1706_v20, %v1524_v22  ;;  %v1701_v26 = vld [vmem:[#allocation12 + $0xa4] sm:$0xf]  ;;  %v1500_v27 = vld [vmem:[#allocation12 + $0xb0] sm:$0xf0]  ;;  %v1506_v28 = vld [vmem:[#allocation12 + $0xa8] sm:$0xf]  ;;  %v1499_v29 = vor.u32 %v1703_v24, %v1498_v23 }
  0x6d   : > { %732 = vmatpush.bf16.msra.mxu0 %v1515_v16  ;;  %v1704_v30 = vld [vmem:[#allocation12 + $0xb4] sm:$0xf0]  ;;  %v1702_v31 = vld [vmem:[#allocation12 + $0xac] sm:$0xf]  ;;  %v1508_v32 = vld [vmem:[#allocation12 + $0xb8] sm:$0xf0]  ;;  %v1503_v33 = vor.u32 %v1701_v26, %v1500_v27 }
  0x6e   : > { %745 = vmatpush.bf16.msra.mxu1 %v1519_v17  ;;  %758 = vmatpush.bf16.msra.mxu2 %v1523_v21  ;;  %v1507_v34 = vor.u32 %v1704_v30, %v1506_v28  ;;  %v1482_v35 = vld [vmem:[#allocation12 + $0x80] sm:$0xf]  ;;  %v1699_v36 = vld [vmem:[#allocation12 + $0x8c] sm:$0xf0]  ;;  %v1697_v37 = vld [vmem:[#allocation12 + $0x84] sm:$0xf]  ;;  %v1511_v38 = vor.u32 %v1702_v31, %v1508_v32 }
  0x6f   : > { %771 = vmatpush.bf16.msra.mxu3 %v1527_v25  ;;  %v1484_v39 = vld [vmem:[#allocation12 + $0x90] sm:$0xf0]  ;;  %v1490_v40 = vld [vmem:[#allocation12 + $0x88] sm:$0xf]  ;;  %v1700_v41 = vld [vmem:[#allocation12 + $0x94] sm:$0xf0]  ;;  %v1483_v44 = vor.u32 %v1699_v36, %v1482_v35 }
  0x70   : > { %v1698_v42 = vld [vmem:[#allocation12 + $0x8c] sm:$0xf]  ;;  %v1492_v43 = vld [vmem:[#allocation12 + $0x98] sm:$0xf0]  ;;  %v1487_v45 = vor.u32 %v1697_v37, %v1484_v39  ;;  %v1491_v46 = vor.u32 %v1700_v41, %v1490_v40  ;;  %v1466_v47 = vld [vmem:[#allocation12 + $0x60] sm:$0xf]  ;;  %v451_v39 = vstv %s2373_s26 }
  0x71   : > { %733 = vmatpush.bf16.msra.mxu0 %v1499_v29  ;;  %v1695_v48 = vld [vmem:[#allocation12 + $0x6c] sm:$0xf0]  ;;  %v1693_v49 = vld [vmem:[#allocation12 + $0x64] sm:$0xf]  ;;  %v1495_v50 = vor.u32 %v1698_v42, %v1492_v43  ;;  %v1468_v51 = vld [vmem:[#allocation12 + $0x70] sm:$0xf0] }
  0x72   : > { %746 = vmatpush.bf16.msra.mxu1 %v1503_v33  ;;  %759 = vmatpush.bf16.msra.mxu2 %v1507_v34  ;;  %v1474_v52 = vld [vmem:[#allocation12 + $0x68] sm:$0xf]  ;;  %v1696_v53 = vld [vmem:[#allocation12 + $0x74] sm:$0xf0]  ;;  %v1694_v54 = vld [vmem:[#allocation12 + $0x6c] sm:$0xf]  ;;  %v1467_v56 = vor.u32 %v1695_v48, %v1466_v47  ;;  %v1471_v57 = vor.u32 %v1693_v49, %v1468_v51  ;;  %v439_v34 = vstv %s2367_s23 }
  0x73   : > { %772 = vmatpush.bf16.msra.mxu3 %v1511_v38  ;;  %v1476_v55 = vld [vmem:[#allocation12 + $0x78] sm:$0xf0]  ;;  %v1475_v58 = vor.u32 %v1696_v53, %v1474_v52  ;;  %v1450_v59 = vld [vmem:[#allocation12 + $0x40] sm:$0xf]  ;;  %v1691_v60 = vld [vmem:[#allocation12 + $0x4c] sm:$0xf0] }
  0x74   : > { %v1689_v61 = vld [vmem:[#allocation12 + $0x44] sm:$0xf]  ;;  %v1479_v62 = vor.u32 %v1694_v54, %v1476_v55  ;;  %v1452_v63 = vld [vmem:[#allocation12 + $0x50] sm:$0xf0]  ;;  %v1458_v0 = vld [vmem:[#allocation12 + $0x48] sm:$0xf]  ;;  %v1451_v4 = vor.u32 %v1691_v60, %v1450_v59 }
  0x75   : > { %734 = vmatpush.bf16.msra.mxu0 %v1483_v44  ;;  %v1692_v1 = vld [vmem:[#allocation12 + $0x54] sm:$0xf0]  ;;  %v1690_v2 = vld [vmem:[#allocation12 + $0x4c] sm:$0xf]  ;;  %v1460_v3 = vld [vmem:[#allocation12 + $0x58] sm:$0xf0]  ;;  %v1455_v6 = vor.u32 %v1689_v61, %v1452_v63 }
  0x76   : > { %747 = vmatpush.bf16.msra.mxu1 %v1487_v45  ;;  %760 = vmatpush.bf16.msra.mxu2 %v1491_v46  ;;  %v1434_v5 = vld [vmem:[#allocation12 + $0x20] sm:$0xf]  ;;  %v1459_v7 = vor.u32 %v1692_v1, %v1458_v0  ;;  %v1687_v8 = vld [vmem:[#allocation12 + $0x2c] sm:$0xf0]  ;;  %v1685_v9 = vld [vmem:[#allocation12 + $0x24] sm:$0xf]  ;;  %v1463_v11 = vor.u32 %v1690_v2, %v1460_v3 }
  0x77   : > { %773 = vmatpush.bf16.msra.mxu3 %v1495_v50  ;;  %v1436_v10 = vld [vmem:[#allocation12 + $0x30] sm:$0xf0]  ;;  %v1442_v12 = vld [vmem:[#allocation12 + $0x28] sm:$0xf]  ;;  %v1688_v13 = vld [vmem:[#allocation12 + $0x34] sm:$0xf0]  ;;  %v1435_v16 = vor.u32 %v1687_v8, %v1434_v5 }
  0x78   : > { %v1686_v14 = vld [vmem:[#allocation12 + $0x2c] sm:$0xf]  ;;  %v1444_v15 = vld [vmem:[#allocation12 + $0x38] sm:$0xf0]  ;;  %v1418_v17 = vld [vmem:[#allocation12] sm:$0xf]  ;;  %v1439_v19 = vor.u32 %v1685_v9, %v1436_v10  ;;  %v1443_v20 = vor.u32 %v1688_v13, %v1442_v12 }
  0x79   : > { %735 = vmatpush.bf16.msra.mxu0 %v1467_v56  ;;  %v1683_v18 = vld [vmem:[#allocation12 + $0xc] sm:$0xf0]  ;;  %v1681_v21 = vld [vmem:[#allocation12 + $0x4] sm:$0xf]  ;;  %v1420_v22 = vld [vmem:[#allocation12 + $0x10] sm:$0xf0]  ;;  %v1447_v23 = vor.u32 %v1686_v14, %v1444_v15 }
  0x7a   : > { %748 = vmatpush.bf16.msra.mxu1 %v1471_v57  ;;  %761 = vmatpush.bf16.msra.mxu2 %v1475_v58  ;;  %v1426_v24 = vld [vmem:[#allocation12 + $0x8] sm:$0xf]  ;;  %v1684_v25 = vld [vmem:[#allocation12 + $0x14] sm:$0xf0]  ;;  %v1682_v26 = vld [vmem:[#allocation12 + $0xc] sm:$0xf]  ;;  %v1419_v28 = vor.u32 %v1683_v18, %v1418_v17  ;;  %v1423_v29 = vor.u32 %v1681_v21, %v1420_v22 }
  0x7b   : > { %774 = vmatpush.bf16.msra.mxu3 %v1479_v62  ;;  %v1428_v27 = vld [vmem:[#allocation12 + $0x18] sm:$0xf0]  ;;  %s2375_s0 = sld [smem:[#allocation4 + $0x2]]  ;;  %v1427_v30 = vor.u32 %v1684_v25, %v1426_v24  ;;  %s432_s19 = scalar_lea.vmem [#allocation11], %s2363_s11  ;;  %v561_v18 = vld [vmem:[%s2497_s5] sm:$0xf] }
  0x7c   : > { %v433_v31 = vld [vmem:[%s432_s19] sm:$0x1]  ;;  %s2378_s18 = sld [smem:[#allocation8 + $0x2]]  ;;  %v1431_v32 = vor.u32 %v1682_v26, %v1428_v27  ;;  %s435_s22 = scalar_lea.vmem [#allocation11], %s2365_s17  ;;  %v565_v27 = vperm.slane %v561_v18, 2 }
  0x7d   : > { %736 = vmatpush.bf16.msra.mxu0 %v1451_v4  ;;  %v436_v33 = vld [vmem:[%s435_s22] sm:$0x1]  ;;  %s2382_s14 = sld [smem:[#allocation10 + $0x2]]  ;;  %s444_s2 = scalar_lea.vmem [#allocation11], %s2369_s21 }
  0x7e   : > { %749 = vmatpush.bf16.msra.mxu1 %v1455_v6  ;;  %762 = vmatpush.bf16.msra.mxu2 %v1459_v7  ;;  %v437_v35 = vsub.f32 %v436_v33, %v433_v31  ;;  %s2384_s1 = sld [smem:[#allocation4 + $0x3]]  ;;  %v445_v36 = vld [vmem:[%s444_s2] sm:$0x1]  ;;  %s447_s16 = scalar_lea.vmem [#allocation11], %s2371_s24 }
  0x7f   : > { %775 = vmatpush.bf16.msra.mxu3 %v1463_v11  ;;  %s2387_s12 = sld [smem:[#allocation8 + $0x3]]  ;;  %v448_v38 = vld [vmem:[%s447_s16] sm:$0x1] }
  0x80   : > { %v440_v37 = vmul.f32 %v439_v34, %v437_v35  ;;  %s2391_s20 = sld [smem:[#allocation10 + $0x3]]  ;;  %v449_v40 = vsub.f32 %v448_v38, %v445_v36 }
  0x81   : > { %737 = vmatpush.bf16.msra.mxu0 %v1435_v16  ;;  %s1404_s11 = sld [smem:[#allocation4 + $0x4]]  ;;  %s456_s17 = scalar_lea.vmem [#allocation11], %s2375_s0 }
  0x82   : > { %750 = vmatpush.bf16.msra.mxu1 %v1439_v19  ;;  %763 = vmatpush.bf16.msra.mxu2 %v1443_v20  ;;  %v441_v41 = vadd.f32 %v440_v37, %v433_v31  ;;  %v457_v42 = vld [vmem:[%s456_s17] sm:$0x1]  ;;  %s1405_s23 = sld [smem:[#allocation8 + $0x4]]  ;;  %v452_v43 = vmul.f32 %v451_v39, %v449_v40  ;;  %s459_s21 = scalar_lea.vmem [#allocation11], %s2378_s18  ;;  %v563_v19 = vperm.slane %v561_v18, 0  ;;  %v564_v20 = vperm.slane %v561_v18, 1 }
  0x83   : > { %776 = vmatpush.bf16.msra.mxu3 %v1447_v23  ;;  %v460_v44 = vld [vmem:[%s459_s21] sm:$0x1]  ;;  %v463_v45 = vstv %s2382_s14  ;;  %s2396_s19 = sld [smem:[#allocation10 + $0x4]] }
  0x84   : > { %442 = vst [vmem:[#allocation2] sm:$0x1] %v441_v41  ;;  %v461_v46 = vsub.f32 %v460_v44, %v457_v42  ;;  %s1407_s24 = sld [smem:[#allocation4 + $0x5]]  ;;  %v453_v47 = vadd.f32 %v452_v43, %v445_v36  ;;  %s468_s26 = scalar_lea.vmem [#allocation11], %s2384_s1 }
  0x85   : > { %738 = vmatpush.bf16.msra.mxu0 %v1419_v28  ;;  %v469_v48 = vld [vmem:[%s468_s26] sm:$0x1]  ;;  %s1408_s22 = sld [smem:[#allocation8 + $0x5]]  ;;  %s471_s0 = scalar_lea.vmem [#allocation11], %s2387_s12  ;;  %v566_v28 = vperm.slane %v561_v18, 3 }
  0x86   : > { %751 = vmatpush.bf16.msra.mxu1 %v1423_v29  ;;  %764 = vmatpush.bf16.msra.mxu2 %v1427_v30  ;;  %v464_v49 = vmul.f32 %v463_v45, %v461_v46  ;;  %v472_v50 = vld [vmem:[%s471_s0] sm:$0x1]  ;;  %v475_v51 = vstv %s2391_s20  ;;  %s2401_s2 = sld [smem:[#allocation10 + $0x5]]  ;;  %454 = vst [vmem:[#allocation2 + $0x1] sm:$0x1] %v453_v47 }
  0x87   : > { %777 = vmatpush.bf16.msra.mxu3 %v1431_v32  ;;  %v473_v52 = vsub.f32 %v472_v50, %v469_v48  ;;  %s1410_s18 = sld [smem:[#allocation4 + $0x6]]  ;;  %s480_s14 = scalar_lea.vmem [#allocation11], %s1404_s11 }
  0x88   : > { %v465_v53 = vadd.f32 %v464_v49, %v457_v42  ;;  %v481_v54 = vld [vmem:[%s480_s14] sm:$0x1]  ;;  %s1411_s16 = sld [smem:[#allocation8 + $0x6]]  ;;  %s483_s17 = scalar_lea.vmem [#allocation11], %s1405_s23 }
  0x89   : > { %v476_v55 = vmul.f32 %v475_v51, %v473_v52  ;;  %v484_v56 = vld [vmem:[%s483_s17] sm:$0x1]  ;;  %v487_v57 = vstv %s2396_s19  ;;  %s1412_s1 = sld [smem:[#allocation10 + $0x6]] }
  0x8a   : > { %466 = vst [vmem:[#allocation2 + $0x2] sm:$0x1] %v465_v53  ;;  %v485_v58 = vsub.f32 %v484_v56, %v481_v54  ;;  %s1413_s12 = sld [smem:[#allocation4 + $0x7]]  ;;  %s492_s20 = scalar_lea.vmem [#allocation11], %s1407_s24 }
  0x8b   : > { %v477_v59 = vadd.f32 %v476_v55, %v469_v48  ;;  %v493_v60 = vld [vmem:[%s492_s20] sm:$0x1]  ;;  %s1414_s21 = sld [smem:[#allocation8 + $0x7]]  ;;  %s495_s26 = scalar_lea.vmem [#allocation11], %s1408_s22 }
  0x8c   : > { %v488_v61 = vmul.f32 %v487_v57, %v485_v58  ;;  %v496_v62 = vld [vmem:[%s495_s26] sm:$0x1]  ;;  %v499_v63 = vstv %s2401_s2  ;;  %s1415_s11 = sld [smem:[#allocation10 + $0x7]] }
  0x8d   : > { %478 = vst [vmem:[#allocation2 + $0x3] sm:$0x1] %v477_v59  ;;  %v497_v0 = vsub.f32 %v496_v62, %v493_v60  ;;  %s504_s0 = scalar_lea.vmem [#allocation11], %s1410_s18 }
  0x8e   : > { %v489_v1 = vadd.f32 %v488_v61, %v481_v54  ;;  %v505_v2 = vld [vmem:[%s504_s0] sm:$0x1]  ;;  %s507_s23 = scalar_lea.vmem [#allocation11], %s1411_s16 }
  0x8f   : > { %v500_v3 = vmul.f32 %v499_v63, %v497_v0  ;;  %v508_v4 = vld [vmem:[%s507_s23] sm:$0x1]  ;;  %v511_v5 = vstv %s1412_s1 }
  0x90   : > { %490 = vst [vmem:[#allocation2 + $0x4] sm:$0x1] %v489_v1  ;;  %v509_v6 = vsub.f32 %v508_v4, %v505_v2  ;;  %s516_s19 = scalar_lea.vmem [#allocation11], %s1413_s12 }
  0x91   : > { %v501_v7 = vadd.f32 %v500_v3, %v493_v60  ;;  %v517_v8 = vld [vmem:[%s516_s19] sm:$0x1]  ;;  %s519_s24 = scalar_lea.vmem [#allocation11], %s1414_s21 }
  0x92   : > { %v512_v9 = vmul.f32 %v511_v5, %v509_v6  ;;  %v520_v10 = vld [vmem:[%s519_s24] sm:$0x1]  ;;  %v523_v11 = vstv %s1415_s11 }
  0x93   : > { %502 = vst [vmem:[#allocation2 + $0x5] sm:$0x1] %v501_v7  ;;  %v521_v12 = vsub.f32 %v520_v10, %v517_v8 }
  0x94   : > { %v513_v13 = vadd.f32 %v512_v9, %v505_v2 }
  0x95   : > { %v524_v14 = vmul.f32 %v523_v11, %v521_v12 }
  0x96   : > { %514 = vst [vmem:[#allocation2 + $0x6] sm:$0x1] %v513_v13 }
  0x97   : > { %v525_v15 = vadd.f32 %v524_v14, %v517_v8 }
  0x99   : > { %526 = vst [vmem:[#allocation2 + $0x7] sm:$0x1] %v525_v15 }
  0xa0   : > { %v527_v16 = vld [vmem:[#allocation2] sm:$0xff] }
  0xa1   : > { %v528_v17 = vpack.c.bf16 %v527_v16, %v527_v16 }
  0xa3   : > { %739 = vmatmul.bf16.vlgmr.msra.gmra.mxu0 %v528_v17  ;;  %752 = vmatmul.bf16.vlgmr.msra.gmra.mxu1 %v528_v17 }
  0xa4   : > { %765 = vmatmul.bf16.vlgmr.msra.gmra.mxu2 %v528_v17  ;;  %778 = vmatmul.bf16.vlgmr.msra.gmra.mxu3 %v528_v17 }
 0x120   : > { %v740_v21 = vpop.f32.mrf.mxu0  ;;  %v753_v22 = vpop.f32.mrf.mxu1 }
 0x121   : > { %v2408_v23 = vadd.f32 %v740_v21, %v563_v19  ;;  %v2410_v24 = vadd.f32 %v753_v22, %v564_v20 }
 0x123   : > { %v1544_v25 = vmul.f32 -1.442695, %v2408_v23  ;;  %v1545_v26 = vmul.f32 -1.442695, %v2410_v24 }
 0x125   : > { %1853 = vpow2.f32 %v1544_v25 }
 0x126   : > { %1855 = vpow2.f32 %v1545_v26 }
 0x127   : > { %v766_v29 = vpop.f32.mrf.mxu2  ;;  %v779_v30 = vpop.f32.mrf.mxu3 }
 0x128   : > { %v2414_v31 = vadd.f32 %v766_v29, %v565_v27  ;;  %v2416_v32 = vadd.f32 %v779_v30, %v566_v28  ;;  %v742_v33 = vpop.f32.mrf.mxu0  ;;  %v755_v34 = vpop.f32.mrf.mxu1 }
 0x12a   : > { %v1546_v35 = vmul.f32 -1.442695, %v2414_v31  ;;  %v1547_v36 = vmul.f32 -1.442695, %v2416_v32 }
 0x12b   : > { %v1854_v37 = vpop.eup %1853 }
 0x12c   : > { %v1856_v38 = vpop.eup %1855  ;;  %v795_v39 = vadd.f32 1.0, %v1854_v37  ;;  %1857 = vpow2.f32 %v1546_v35 }
 0x12d   : > { %v796_v40 = vadd.f32 1.0, %v1856_v38  ;;  %1859 = vpow2.f32 %v1547_v36 }
 0x12e   : > { %1861 = vrcp.f32 %v795_v39  ;;  %vm804_vm0 = vweird.f32 %v795_v39  ;;  %v808_v52 = vand.u32 2147483647, %v795_v39  ;;  %v810_v53 = vand.u32 2147483648, %v795_v39 }
 0x12f   : > { %1863 = vrcp.f32 %v796_v40  ;;  %v768_v41 = vpop.f32.mrf.mxu2  ;;  %v781_v42 = vpop.f32.mrf.mxu3  ;;  %v823_v56 = vand.u32 2147483647, %v796_v40  ;;  %v825_v57 = vand.u32 2147483648, %v796_v40  ;;  %vm819_vm2 = vweird.f32 %v796_v40 }
 0x130   : > { %v811_v61 = vor.u32 1.1754944e-38, %v810_v53  ;;  %vm809_vm5 = vcmp.eq.f32.partialorder %v808_v52, 8.507059e+37 }
 0x131   : > { %vm824_vm7 = vcmp.eq.f32.partialorder %v823_v56, 8.507059e+37  ;;  %v826_v2 = vor.u32 1.1754944e-38, %v825_v57 }
 0x132   : > { %v1858_v43 = vpop.eup %1857 }
 0x133   : > { %v1860_v44 = vpop.eup %1859  ;;  %v797_v45 = vadd.f32 1.0, %v1858_v43 }
 0x134   : > { %v1862_v46 = vpop.eup %1861  ;;  %v798_v47 = vadd.f32 1.0, %v1860_v44 }
 0x135   : > { %v1864_v48 = vpop.eup %1863  ;;  %v800_v49 = vmul.f32 %v1862_v46, %v795_v39  ;;  %1865 = vrcp.f32 %v797_v45  ;;  %vm805_vm1 = vweird.f32 %v1862_v46  ;;  %v838_v9 = vand.u32 2147483647, %v797_v45 }
 0x136   : > { %v815_v50 = vmul.f32 %v1864_v48, %v796_v40  ;;  %1867 = vrcp.f32 %v798_v47  ;;  %vm820_vm3 = vweird.f32 %v1864_v48  ;;  %vm806_vm4 = vmor %vm804_vm0, %vm805_vm1  ;;  %v840_v10 = vand.u32 2147483648, %v797_v45 }
 0x137   : > { %v801_v51 = vsub.f32 1.0, %v800_v49  ;;  %vm821_vm6 = vmor %vm819_vm2, %vm820_vm3  ;;  %vm834_vm9 = vweird.f32 %v797_v45  ;;  %v855_v14 = vand.u32 2147483648, %v798_v47  ;;  %v853_v17 = vand.u32 2147483647, %v798_v47 }
 0x138   : > { %v816_v54 = vsub.f32 1.0, %v815_v50  ;;  %v841_v18 = vor.u32 1.1754944e-38, %v840_v10  ;;  %vm839_vm12 = vcmp.eq.f32.partialorder %v838_v9, 8.507059e+37  ;;  %vm849_vm13 = vweird.f32 %v798_v47 }
 0x139   : > { %v802_v55 = vmul.f32 %v1862_v46, %v801_v51  ;;  %v856_v22 = vor.u32 1.1754944e-38, %v855_v14  ;;  %vm854_vm15 = vcmp.eq.f32.partialorder %v853_v17, 8.507059e+37 }
 0x13a   : > { %v817_v58 = vmul.f32 %v1864_v48, %v816_v54 }
 0x13b   : > { %v1866_v59 = vpop.eup %1865  ;;  %v803_v60 = vadd.f32 %v1862_v46, %v802_v55 }
 0x13c   : > { %v818_v62 = vadd.f32 %v1864_v48, %v817_v58  ;;  %v830_v63 = vmul.f32 %v1866_v59, %v797_v45  ;;  %v1868_v0 = vpop.eup %1867  ;;  %vm835_vm8 = vweird.f32 %v1866_v59 }
 0x13d   : > { %v807_v1 = vsel %vm806_vm4, %v1862_v46, %v803_v60  ;;  %v845_v6 = vmul.f32 %v1868_v0, %v798_v47  ;;  %vm850_vm10 = vweird.f32 %v1868_v0  ;;  %vm836_vm11 = vmor %vm834_vm9, %vm835_vm8 }
 0x13e   : > { %v812_v3 = vsel %vm809_vm5, %v811_v61, %v807_v1  ;;  %v822_v4 = vsel %vm821_vm6, %v1864_v48, %v818_v62  ;;  %v831_v5 = vsub.f32 1.0, %v830_v63  ;;  %vm851_vm14 = vmor %vm849_vm13, %vm850_vm10 }
 0x13f   : > { %v859_v7 = vmul.f32 %v812_v3, %v2408_v23  ;;  %v827_v8 = vsel %vm824_vm7, %v826_v2, %v822_v4  ;;  %v846_v13 = vsub.f32 1.0, %v845_v6 }
 0x140   : > { %v860_v11 = vmul.f32 %v827_v8, %v2410_v24  ;;  %v832_v12 = vmul.f32 %v1866_v59, %v831_v5 }
 0x141   : > { %863 = vst [vmem:[#allocation3 + $0x10] sm:$0xff] %v859_v7  ;;  %v847_v16 = vmul.f32 %v1868_v0, %v846_v13 }
 0x142   : > { %864 = vst [vmem:[#allocation3] sm:$0xff] %v860_v11  ;;  %v833_v15 = vadd.f32 %v1866_v59, %v832_v12 }
 0x143   : > { %v848_v20 = vadd.f32 %v1868_v0, %v847_v16 }
 0x144   : > { %v837_v19 = vsel %vm836_vm11, %v1866_v59, %v833_v15 }
 0x145   : > { %v842_v21 = vsel %vm839_vm12, %v841_v18, %v837_v19  ;;  %v852_v24 = vsel %vm851_vm14, %v1868_v0, %v848_v20 }
 0x146   : > { %v861_v23 = vmul.f32 %v842_v21, %v2414_v31  ;;  %v857_v25 = vsel %vm854_vm15, %v856_v22, %v852_v24 }
 0x147   : > { %v862_v26 = vmul.f32 %v857_v25, %v2416_v32 }
 0x148   : > { %865 = vst [vmem:[#allocation3 + $0x18] sm:$0xff] %v861_v23 }
 0x149   : > { %866 = vst [vmem:[#allocation3 + $0x8] sm:$0xff] %v862_v26 }
 0x14a PF: > { %v1720_v27 = vld [vmem:[%s2351_s13 + $0x38] sm:$0xff]  ;;  %v1719_v31 = vld [vmem:[%s2351_s13 + $0x30] sm:$0xff]  ;;  %v1718_v35 = vld [vmem:[%s2351_s13 + $0x28] sm:$0xff]  ;;  %s1221_s16 = sshll.u32 %s2359_s10, 4  ;;  %s2059_s26 = scalar_lea.hbm %s2500_s8, 32  ;;  %s1222_s16 = int_to_ptr.vmem [resolvable:$true] %s1221_s16 }
 0x14b   : > { %v1728_v28 = vld [vmem:[%s2351_s13 + $0x78] sm:$0xff]  ;;  %1135 = vmatpush.bf16.msra.mxu0 %v1720_v27  ;;  %v1727_v32 = vld [vmem:[%s2351_s13 + $0x70] sm:$0xff]  ;;  %v1726_v36 = vld [vmem:[%s2351_s13 + $0x68] sm:$0xff] }
 0x14c   : > { %v1736_v29 = vld [vmem:[%s2351_s13 + $0xb8] sm:$0xff]  ;;  %1148 = vmatpush.bf16.msra.mxu1 %v1728_v28  ;;  %v1735_v33 = vld [vmem:[%s2351_s13 + $0xb0] sm:$0xff]  ;;  %v1734_v37 = vld [vmem:[%s2351_s13 + $0xa8] sm:$0xff] }
 0x14d   : > { %v1744_v30 = vld [vmem:[%s2351_s13 + $0xf8] sm:$0xff]  ;;  %1161 = vmatpush.bf16.msra.mxu2 %v1736_v29  ;;  %v1743_v34 = vld [vmem:[%s2351_s13 + $0xf0] sm:$0xff]  ;;  %v1742_v38 = vld [vmem:[%s2351_s13 + $0xe8] sm:$0xff] }
 0x14e   : > { %1174 = vmatpush.bf16.msra.mxu3 %v1744_v30  ;;  %v1717_v39 = vld [vmem:[%s2351_s13 + $0x20] sm:$0xff]  ;;  %v1716_v43 = vld [vmem:[%s2351_s13 + $0x18] sm:$0xff]  ;;  %v1715_v47 = vld [vmem:[%s2351_s13 + $0x10] sm:$0xff] }
 0x14f   : > { %1136 = vmatpush.bf16.msra.mxu0 %v1719_v31  ;;  %v1725_v40 = vld [vmem:[%s2351_s13 + $0x60] sm:$0xff]  ;;  %v1724_v44 = vld [vmem:[%s2351_s13 + $0x58] sm:$0xff]  ;;  %v1723_v48 = vld [vmem:[%s2351_s13 + $0x50] sm:$0xff] }
 0x150   : > { %1149 = vmatpush.bf16.msra.mxu1 %v1727_v32  ;;  %v1733_v41 = vld [vmem:[%s2351_s13 + $0xa0] sm:$0xff]  ;;  %v1732_v45 = vld [vmem:[%s2351_s13 + $0x98] sm:$0xff]  ;;  %v1731_v49 = vld [vmem:[%s2351_s13 + $0x90] sm:$0xff] }
 0x151   : > { %1162 = vmatpush.bf16.msra.mxu2 %v1735_v33  ;;  %v1741_v42 = vld [vmem:[%s2351_s13 + $0xe0] sm:$0xff]  ;;  %v1740_v46 = vld [vmem:[%s2351_s13 + $0xd8] sm:$0xff]  ;;  %v1739_v50 = vld [vmem:[%s2351_s13 + $0xd0] sm:$0xff] }
 0x152   : > { %1175 = vmatpush.bf16.msra.mxu3 %v1743_v34  ;;  %v1714_v51 = vld [vmem:[%s2351_s13 + $0x8] sm:$0xff]  ;;  %v1713_v55 = vld [vmem:[%s2351_s13] sm:$0xff]  ;;  %v867_v58 = vld [vmem:[#allocation3 + $0x10] sm:$0xff] }
 0x153   : > { %1137 = vmatpush.bf16.msra.mxu0 %v1718_v35  ;;  %v1722_v52 = vld [vmem:[%s2351_s13 + $0x48] sm:$0xff]  ;;  %v1721_v56 = vld [vmem:[%s2351_s13 + $0x40] sm:$0xff]  ;;  %v870_v62 = vld [vmem:[#allocation3 + $0x8] sm:$0xff]  ;;  %v871_v63 = vpack.c.bf16 %v867_v58, %v867_v58 }
 0x154   : > { %1150 = vmatpush.bf16.msra.mxu1 %v1726_v36  ;;  %v1730_v53 = vld [vmem:[%s2351_s13 + $0x88] sm:$0xff]  ;;  %v1729_v57 = vld [vmem:[%s2351_s13 + $0x80] sm:$0xff]  ;;  %v874_v2 = vpack.c.bf16 %v870_v62, %v870_v62 }
 0x155   : > { %1163 = vmatpush.bf16.msra.mxu2 %v1734_v37  ;;  %v1738_v54 = vld [vmem:[%s2351_s13 + $0xc8] sm:$0xff]  ;;  %v1737_v60 = vld [vmem:[%s2351_s13 + $0xc0] sm:$0xff]  ;;  %s1678_s13 = sshll.u32 %s2200_s9, 3  ;;  %s1209_s9 = scalar_lea.sflag [#allocation6], %s2348_s3 }
 0x156   : > { %1176 = vmatpush.bf16.msra.mxu3 %v1742_v38  ;;  %v868_v59 = vld [vmem:[#allocation3] sm:$0xff]  ;;  %v869_v61 = vld [vmem:[#allocation3 + $0x18] sm:$0xff]  ;;  %s1219_s14 = scalar_lea.hbm %s2500_s8, %s1678_s13 }
 0x157   : > { %1138 = vmatpush.bf16.msra.mxu0 %v1717_v39  ;;  %v872_v0 = vpack.c.bf16 %v868_v59, %v868_v59  ;;  %v873_v1 = vpack.c.bf16 %v869_v61, %v869_v61  ;;  %v1869_v3 = vld [vmem:[%s388_s25] ss:$0 sm:$0xff]  ;;  %s1223_s17 = sshll.u32 %s1219_s14, 4  ;;  %s1224_s17 = int_to_ptr.hbm [resolvable:$true] %s1223_s17 }
 0x158   : > { %1151 = vmatpush.bf16.msra.mxu1 %v1725_v40  ;;  %s2053_s1 = sshra.s32 %s1224_s17, 4  ;;  %s2054_s1 = int_to_ptr.hbm [resolvable:$true] %s2053_s1 }
 0x159   : > { %1164 = vmatpush.bf16.msra.mxu2 %v1733_v41  ;;  %s2055_s12 = scalar_lea.hbm %s2054_s1, 8  ;;  %p2060_p12 = scmp.lt.s32.totalorder %s2054_s1, %s2500_s8 }
 0x15a   : > { %1177 = vmatpush.bf16.msra.mxu3 %v1741_v42  ;;  %p2056_p4 = scmp.ne.s32.totalorder %s2054_s1, %s2055_s12  ;;  %p2061_p7 = scmp.lt.s32.totalorder %s2059_s26, %s2055_s12 }
 0x15b   : > { %1139 = vmatpush.bf16.msra.mxu0 %v1716_v43 }
 0x15c   : > { %1152 = vmatpush.bf16.msra.mxu1 %v1724_v44  ;;  %p2057_p0 = pnand %p2056_p4, %p2260_p5  ;;  %p2062_p1 = por %p2061_p7, %p2060_p12 }
 0x15d   : > { %1165 = vmatpush.bf16.msra.mxu2 %v1732_v45 }
 0x15e   : > { %1178 = vmatpush.bf16.msra.mxu3 %v1740_v46  ;;  %p2058_p3 = pneg %p2057_p0 }
 0x15f   : > { %1140 = vmatpush.bf16.msra.mxu0 %v1715_v47 }
 0x160   : > { %1153 = vmatpush.bf16.msra.mxu1 %v1723_v48  ;;  %p2063_p8 = pnand %p2062_p1, %p2058_p3 }
 0x161   : > { %1166 = vmatpush.bf16.msra.mxu2 %v1731_v49 }
 0x162   : > { %1179 = vmatpush.bf16.msra.mxu3 %v1739_v50 }
 0x163   : > { %1141 = vmatpush.bf16.msra.mxu0 %v1714_v51 }
 0x164   : > { %1154 = vmatpush.bf16.msra.mxu1 %v1722_v52 }
 0x165   : > { %1167 = vmatpush.bf16.msra.mxu2 %v1730_v53 }
 0x166   : > { %1180 = vmatpush.bf16.msra.mxu3 %v1738_v54 }
 0x167   : > { %1142 = vmatpush.bf16.msra.mxu0 %v1713_v55 }
 0x168   : > { %1155 = vmatpush.bf16.msra.mxu1 %v1721_v56 }
 0x169   : > { %1168 = vmatpush.bf16.msra.mxu2 %v1729_v57 }
 0x16a   : > { %1181 = vmatpush.bf16.msra.mxu3 %v1737_v60  ;;  %1143 = vmatmul.bf16.vlgmr.msra.gmra.mxu0 %v871_v63 }
 0x16b   : > { %1156 = vmatmul.bf16.vlgmr.msra.gmra.mxu1 %v872_v0 }
 0x16c   : > { %1169 = vmatmul.bf16.vlgmr.msra.gmra.mxu2 %v873_v1 }
 0x16d   : > { %1182 = vmatmul.bf16.vlgmr.msra.gmra.mxu3 %v874_v2 }
 0x1e7   : > { %v1144_v4 = vpop.f32.mrf.mxu0 }
 0x1e8   : > { %v1157_v5 = vpop.f32.mrf.mxu1  ;;  %v1145_v6 = vadd.f32 %v1869_v3, %v1144_v4 }
 0x1ea   : > { %v1158_v7 = vadd.f32 %v1157_v5, %v1145_v6 }
 0x1ef   : > { %v1170_v8 = vpop.f32.mrf.mxu2  ;;  %v1146_v11 = vpop.f32.mrf.mxu0 }
 0x1f0   : > { %v1183_v9 = vpop.f32.mrf.mxu3  ;;  %v1171_v10 = vadd.f32 %v1170_v8, %v1158_v7  ;;  %v1159_v12 = vpop.f32.mrf.mxu1 }
 0x1f2   : > { %v1184_v13 = vadd.f32 %v1183_v9, %v1171_v10 }
 0x1f4   : > { %v1676_v14 = vmul.f32 -1.442695, %v1184_v13 }
 0x1f6   : > { %1870 = vpow2.f32 %v1676_v14 }
 0x1f7   : > { %v1172_v15 = vpop.f32.mrf.mxu2 }
 0x1f8   : > { %v1185_v16 = vpop.f32.mrf.mxu3 }
 0x1fc   : > { %v1871_v17 = vpop.eup %1870 }
 0x1fd   : > { %v1190_v18 = vadd.f32 1.0, %v1871_v17 }
 0x1ff   : > { %1872 = vrcp.f32 %v1190_v18  ;;  %v1202_v22 = vand.u32 2147483648, %v1190_v18  ;;  %v1200_v24 = vand.u32 2147483647, %v1190_v18  ;;  %vm1196_vm1 = vweird.f32 %v1190_v18 }
 0x201   : > { %v1203_v26 = vor.u32 1.1754944e-38, %v1202_v22  ;;  %vm1201_vm3 = vcmp.eq.f32.partialorder %v1200_v24, 8.507059e+37 }
 0x205   : > { %v1873_v19 = vpop.eup %1872 }
 0x206   : > { %v1192_v20 = vmul.f32 %v1873_v19, %v1190_v18  ;;  %vm1197_vm0 = vweird.f32 %v1873_v19 }
 0x207   : > { %vm1198_vm2 = vmor %vm1196_vm1, %vm1197_vm0 }
 0x208   : > { %v1193_v21 = vsub.f32 1.0, %v1192_v20 }
 0x20a   : > { %v1194_v23 = vmul.f32 %v1873_v19, %v1193_v21 }
 0x20c   : > { %v1195_v25 = vadd.f32 %v1873_v19, %v1194_v23 }
 0x20e   : > { %v1199_v27 = vsel %vm1198_vm2, %v1873_v19, %v1195_v25 }
 0x20f   : > { %v1204_v28 = vsel %vm1201_vm3, %v1203_v26, %v1199_v27 }
 0x210   : > { %v1206_v29 = vmul.f32 %v1204_v28, %v1184_v13 }
 0x212   : > { %1207 = vst [vmem:[%s2359_s10] sm:$0xff] %v1206_v29 }
 0x213   : > { %2066 = shalt.err (!%p2063_p8)
}
 0x214   : > { %1769 = dma.vmem_to_hbm [thread:$0]  (%p2260_p5), %s1222_s16, 128, %s1224_s17, %s1209_s9  }
 0x215 PF: > { %p1809_p10 = scmp.ge.s32.totalorder %s2121_s30, 2  ;;  %s1235_s10 = sand.u32 1, %s2109_s27  }
 0x216   : > { %s1236_s23 = scalar_lea.sflag [#allocation6], %s1235_s10 }
 0x217   : > { %p1795_p2 = pnand %p1809_p10, %p2214_p6 }
 0x219   : > { %p1796_p9 = pneg %p1795_p2 }
 0x21b   : > { %2104 = dma.done.wait (%p1796_p9), %s1236_s23, 128  }
 0x21c   : > { %2106 = vsyncadd (%p1796_p9), %s1236_s23, 4294967168  ;;  %s2535_s30 = sld [smem:[#allocation24_spill]]  ;;  %s2537_s27 = smov %s2113_s28 }
 0x21d   : > { %s2536_s19 = sld [smem:[#allocation25_spill]]  ;;  %s2538_s28 = smov %s2117_s29 }
 0x222   : > { %p22_p11 = scmp.ge.s32.totalorder %s2535_s30, 6  }
 0x223   : > { %s2539_s29 = smov %s2536_s19 }
 0x224   :  { %24 = sbr.rel (!%p22_p11) target bundleno = 12 (0xc), region = 148 }
 0x229   :  { %1242 = vsyncpa [#allocation5], 1 }
 0x22a   :  { %1244 = vsyncpa [#allocation5 + $0x1], 1 }
 0x22b   :  { %1245 = vsyncpa [#allocation13], 1 }
 0x22c   :  { %1246 = vsyncpa [#allocation6], 1 }
 0x22d   :  { %1248 = vsyncpa [#allocation6 + $0x1], 1 }
 0x22e   :  { %1249 = vsyncpa [#allocation7], 1 }
 0x22f   :  { %1251 = vsyncpa [#allocation7 + $0x1], 1 }
 0x230   :  { %1252 = vsyncpa [#allocation9], 1 }

</bundles_post_ra>
